<compile_context>
chip_gen: v6e
topology: v6e:2x2x1
jax: 0.10.0
libtpu: 0.0.40
codegen_flags: <defaults>
</compile_context>

<pallas_src>
import math
import functools

import jax
import jax.numpy as jnp
from jax.experimental import pallas as pl
from jax.experimental.pallas import tpu as pltpu


def _sphere_loss_kernel(y_ref, x_ref, logits_ref, loss_ref, *,
                        t, m, r, lamb, margin_type, needs_mask, last_rows):
    x = x_ref[...].astype(jnp.float32)            # (TN, C) cos_theta tile
    y = y_ref[...]                                # (TN, 1) int32 labels
    TN, C = x.shape

    col = jax.lax.broadcasted_iota(jnp.int32, (TN, C), 1)
    is_target = col == y                          # (TN, C) bool, no f32 one_hot

    def g(z):
        # g_func(z, t) = 2 * ((z + 1) / 2)^t - 1 ; t is a Python int so this
        # lowers to lax.integer_pow (VPU multiplies), not exp/log on the EUP.
        return 2.0 * ((z + 1.0) * 0.5) ** t - 1.0

    if margin_type == "C":
        # cosface additive margin: g(x) - m on target, g(x) + m elsewhere.
        g_m = g(x) + jnp.where(is_target, -m, m)
    else:
        # 'A' / 'M' only modify the per-row target entry: pull it out as a
        # (TN, 1) column (lane reduce on the XLU), transform that column only,
        # and select it back in.  This removes full-tile transcendentals.
        xt = jnp.sum(jnp.where(is_target, x, 0.0), axis=-1, keepdims=True)
        if margin_type == "A":
            # cos(theta + m) via the angle-addition identity (one sqrt / row).
            # PyTorch's clamp_max_(pi) is applied to a copy -> no-op; omitted.
            cos_m = math.cos(m)
            sin_m = math.sin(m)
            sin_t = jnp.sqrt(jnp.maximum(1.0 - xt * xt, 0.0))
            tv = xt * cos_m - sin_t * sin_m
        else:  # "M": cos(m * theta); the torch clamp_max_(pi) is likewise a no-op.
            tv = jnp.cos(m * jnp.arccos(jnp.clip(xt, -1.0, 1.0)))
        g_m = g(jnp.where(is_target, tv, x))

    logits = r * g_m
    # TODO(synk): optional bias `b` not implemented (default is None; the torch
    #             `if b:` branch errors for any multi-element tensor anyway).
    logits_ref[...] = logits.astype(logits_ref.dtype)

    # weight = (lamb*one_hot + (1-lamb)*(1-one_hot)) / r  via a select.
    weight = jnp.where(is_target, lamb / r, (1.0 - lamb) / r)

    # numerically stable binary_cross_entropy_with_logits (target = one_hot)
    bce = (jnp.maximum(logits, 0.0)
           - jnp.where(is_target, logits, 0.0)
           + jnp.log1p(jnp.exp(-jnp.abs(logits))))
    wbce = weight * bce

    if needs_mask:
        last = pl.num_programs(0) - 1

        @pl.when(pl.program_id(0) != last)
        def _():
            loss_ref[...] = jnp.broadcast_to(jnp.sum(wbce), loss_ref.shape)

        @pl.when(pl.program_id(0) == last)
        def _():
            # Mask the padded rows of the partial last tile only (select, so
            # any NaN/Inf from uninitialized padding cannot propagate).
            valid = jax.lax.broadcasted_iota(jnp.int32, (TN, 1), 0) < last_rows
            loss_ref[...] = jnp.broadcast_to(
                jnp.sum(jnp.where(valid, wbce, 0.0)), loss_ref.shape)
    else:
        loss_ref[...] = jnp.broadcast_to(jnp.sum(wbce), loss_ref.shape)


def _device_vmem_bytes():
    try:
        return int(pltpu.get_tpu_info().vmem_capacity_bytes)
    except Exception:
        return 64 * 1024 * 1024          # conservative fallback (v7x-sized)


def _choose_tiling(n, c, vmem_bytes):
    # Two big f32 streams (x in, logits out) x 2 pipeline buffers per block;
    # keep the total well under physical VMEM and size the scoped limit to it.
    if vmem_bytes >= 100 * 1024 * 1024:          # v5e / v6e: 128 MiB VMEM
        per_block_bytes = 12 * 1024 * 1024
        vmem_limit = 96 * 1024 * 1024
    else:                                        # v7x: 64 MiB VMEM
        per_block_bytes = 8 * 1024 * 1024
        vmem_limit = 48 * 1024 * 1024
    budget_elems = per_block_bytes // 4
    # TODO(synk): add a second (column) grid axis for very large class counts
    #             (C >~ 100k); currently only the row dimension is tiled.
    tn = max(8, min(budget_elems // max(c, 1), 64 * 1024))
    tn = max(8, (tn // 8) * 8)                   # keep the (8, 128) layout rule
    if tn >= n:
        tn = n                                   # single full-extent block
    return tn, vmem_limit


def sphere_loss(x, y, *, scale=1.0, margin=0.4, lamb=0.7, t=3,
                margin_type="C", row_tile=None):
    """Pallas implementation of SphereLoss.forward (b=None).

    Returns (loss, logits, weight) matching the PyTorch module.
    """
    N, C = x.shape
    y2d = y.astype(jnp.int32).reshape(N, 1)

    if row_tile is None:
        TN, vmem_limit = _choose_tiling(N, C, _device_vmem_bytes())
    else:
        TN = int(row_tile)
        vmem_limit = 48 * 1024 * 1024
    G = pl.cdiv(N, TN)
    needs_mask = (N % TN) != 0
    last_rows = N - (G - 1) * TN

    kernel = functools.partial(
        _sphere_loss_kernel,
        t=int(t), m=float(margin), r=float(scale), lamb=float(lamb),
        margin_type=margin_type, needs_mask=needs_mask, last_rows=last_rows,
    )

    itemsize = jnp.dtype(x.dtype).itemsize
    cost = pl.CostEstimate(
        flops=25 * N * C,
        transcendentals=2 * N * C,
        bytes_accessed=int(2 * N * C * itemsize + N * 4 + G * 8 * 128 * 4),
    )

    logits, partial = pl.pallas_call(
        kernel,
        grid=(G,),
        out_shape=(
            jax.ShapeDtypeStruct((N, C), x.dtype),           # logits
            jax.ShapeDtypeStruct((G, 8, 128), jnp.float32),  # per-tile loss sums
        ),
        in_specs=[
            pl.BlockSpec((TN, 1), lambda i: (i, 0)),         # y labels
            pl.BlockSpec((TN, C), lambda i: (i, 0)),         # cos_theta
        ],
        out_specs=(
            pl.BlockSpec((TN, C), lambda i: (i, 0)),
            pl.BlockSpec((1, 8, 128), lambda i: (i, 0, 0)),
        ),
        compiler_params=pltpu.CompilerParams(
            dimension_semantics=("parallel",),               # 2 TCs on v7x
            vmem_limit_bytes=vmem_limit,
        ),
        cost_estimate=cost,
    )(y2d, x)

    loss = jnp.sum(partial[:, 0, 0]) / (N * C)

    # `weight` is a two-valued function of the label; rebuild it here instead
    # of streaming an extra (N, C) f32 array through the kernel (perf review).
    is_target = jnp.arange(C, dtype=jnp.int32)[None, :] == y2d
    weight = jnp.where(is_target, lamb / scale,
                       (1.0 - lamb) / scale).astype(jnp.float32)
    return loss, logits, weight


def _reference(x, y, scale, m, lamb, t, mt):
    # Pure-JAX mirror of the PyTorch forward (b=None).  Note the torch
    # clamp_max_(pi) lines act on advanced-indexing copies (no-ops).
    N, C = x.shape
    one_hot = jax.nn.one_hot(y, C, dtype=jnp.float32)
    g = lambda z: 2.0 * ((z + 1.0) * 0.5) ** t - 1.0
    if mt == "C":
        g_m = g(x) - m * (2.0 * one_hot - 1.0)
    else:
        theta = jnp.arccos(jnp.clip(x, -1.0, 1.0))
        theta_m = jnp.where(one_hot > 0,
                            theta + m if mt == "A" else theta * m, theta)
        g_m = g(jnp.cos(theta_m))
    logits = scale * g_m
    weight = (lamb * one_hot + (1.0 - lamb) * (1.0 - one_hot)) / scale
    bce = (jnp.maximum(logits, 0.0) - logits * one_hot
           + jnp.log1p(jnp.exp(-jnp.abs(logits))))
    return jnp.sum(weight * bce) / (N * C), logits, weight


if __name__ == "__main__":
    key = jax.random.PRNGKey(0)
    kx, ky = jax.random.split(key)

    # small shapes: batch N=8, num_classes C=128 (x plays the role of cos_theta)
    N, C = 8, 128
    x = jnp.tanh(jax.random.normal(kx, (N, C), dtype=jnp.float32))  # in (-1, 1)
    y = jax.random.randint(ky, (N,), 0, C, dtype=jnp.int32)

    results = {mt: sphere_loss(x, y, scale=1.0, margin=0.4, lamb=0.7, t=3,
                               margin_type=mt) for mt in ("C", "A", "M")}
    jax.block_until_ready(results)

    for mt in ("C", "A", "M"):
        loss_k, logits_k, weight_k = results[mt]
        loss_r, logits_r, weight_r = _reference(x, y, 1.0, 0.4, 0.7, 3, mt)
        assert jnp.allclose(logits_k, logits_r, atol=2e-5, rtol=2e-5), mt
        assert jnp.allclose(weight_k, weight_r, atol=1e-6, rtol=1e-6), mt
        assert jnp.allclose(loss_k, loss_r, atol=2e-5, rtol=2e-5), mt

    # exercise the partial-last-tile (masked) path: N not a multiple of TN
    N2 = 20
    x2 = jnp.tanh(jax.random.normal(kx, (N2, C), dtype=jnp.float32))
    y2 = jax.random.randint(ky, (N2,), 0, C, dtype=jnp.int32)
    loss2, logits2, _ = sphere_loss(x2, y2, margin_type="C", row_tile=8)
    loss2_r, logits2_r, _ = _reference(x2, y2, 1.0, 0.4, 0.7, 3, "C")
    jax.block_until_ready((loss2, logits2))
    assert jnp.allclose(logits2, logits2_r, atol=2e-5, rtol=2e-5)
    assert jnp.allclose(loss2, loss2_r, atol=2e-5, rtol=2e-5)

    print("KERNEL_OK")
</pallas_src>

<mosaic_0001>
module attributes {stable_mosaic.version = 11 : i64} {
  func.func @_sphere_loss_kernel(%arg0: i32, %arg1: memref<8x1xi32, #tpu.memory_space<vmem>>, %arg2: memref<8x128xf32, #tpu.memory_space<vmem>>, %arg3: memref<8x128xf32, #tpu.memory_space<vmem>>, %arg4: memref<1x8x128xf32, #tpu.memory_space<vmem>>) attributes {dimension_semantics = [#tpu.dimension_semantics<parallel>], iteration_bounds = array<i64: 1>, scalar_prefetch = 0 : i64, scratch_operands = 0 : i64, tpu.core_type = #tpu.core_type<tc>, window_params = [{transform_indices = @transform_0, window_bounds = array<i64: 8, 1>}, {transform_indices = @transform_1, window_bounds = array<i64: 8, 128>}, {transform_indices = @transform_2, window_bounds = array<i64: 8, 128>}, {transform_indices = @transform_3, window_bounds = array<i64: 1, 8, 128>}]} {
    %c0 = arith.constant 0 : index
    %c0_0 = arith.constant 0 : index
    %0 = vector.load %arg2[%c0, %c0_0] : memref<8x128xf32, #tpu.memory_space<vmem>>, vector<8x128xf32>
    %c0_1 = arith.constant 0 : index
    %c0_2 = arith.constant 0 : index
    %1 = vector.load %arg1[%c0_1, %c0_2] : memref<8x1xi32, #tpu.memory_space<vmem>>, vector<8x1xi32>
    %2 = tpu.iota {dimensions = array<i32: 1>} : vector<8x128xi32>
    %3 = vector.broadcast %1 : vector<8x1xi32> to vector<8x128xi32>
    %4 = arith.cmpi eq, %2, %3 : vector<8x128xi32>
    %cst = arith.constant 1.000000e+00 : f32
    %5 = vector.broadcast %cst : f32 to vector<8x128xf32>
    %6 = arith.addf %0, %5 : vector<8x128xf32>
    %cst_3 = arith.constant 5.000000e-01 : f32
    %7 = vector.broadcast %cst_3 : f32 to vector<8x128xf32>
    %8 = arith.mulf %6, %7 : vector<8x128xf32>
    %9 = arith.mulf %8, %8 : vector<8x128xf32>
    %10 = arith.mulf %8, %9 : vector<8x128xf32>
    %cst_4 = arith.constant 2.000000e+00 : f32
    %11 = vector.broadcast %cst_4 : f32 to vector<8x128xf32>
    %12 = arith.mulf %11, %10 : vector<8x128xf32>
    %cst_5 = arith.constant 1.000000e+00 : f32
    %13 = vector.broadcast %cst_5 : f32 to vector<8x128xf32>
    %14 = arith.subf %12, %13 : vector<8x128xf32>
    %cst_6 = arith.constant -4.000000e-01 : f32
    %cst_7 = arith.constant 4.000000e-01 : f32
    %15 = vector.broadcast %cst_6 : f32 to vector<8x128xf32>
    %16 = vector.broadcast %cst_7 : f32 to vector<8x128xf32>
    %17 = arith.select %4, %15, %16 : vector<8x128xi1>, vector<8x128xf32>
    %18 = arith.addf %14, %17 : vector<8x128xf32>
    %cst_8 = arith.constant 1.000000e+00 : f32
    %19 = vector.broadcast %cst_8 : f32 to vector<8x128xf32>
    %20 = arith.mulf %19, %18 : vector<8x128xf32>
    %c0_9 = arith.constant 0 : index
    %c0_10 = arith.constant 0 : index
    %21 = vector.load %arg3[%c0_9, %c0_10] : memref<8x128xf32, #tpu.memory_space<vmem>>, vector<8x128xf32>
    tpu.vector_store %arg3[%c0_9, %c0_10], %20 {strides = array<i32>} : memref<8x128xf32, #tpu.memory_space<vmem>>, vector<8x128xf32>,
    %cst_11 = arith.constant 0.699999988 : f32
    %cst_12 = arith.constant 3.000000e-01 : f32
    %22 = vector.broadcast %cst_11 : f32 to vector<8x128xf32>
    %23 = vector.broadcast %cst_12 : f32 to vector<8x128xf32>
    %24 = arith.select %4, %22, %23 : vector<8x128xi1>, vector<8x128xf32>
    %cst_13 = arith.constant 0.000000e+00 : f32
    %25 = vector.broadcast %cst_13 : f32 to vector<8x128xf32>
    %26 = arith.maximumf %20, %25 : vector<8x128xf32>
    %cst_14 = arith.constant 0.000000e+00 : f32
    %27 = vector.broadcast %cst_14 : f32 to vector<8x128xf32>
    %28 = arith.select %4, %20, %27 : vector<8x128xi1>, vector<8x128xf32>
    %29 = arith.subf %26, %28 : vector<8x128xf32>
    %30 = math.absf %20 : vector<8x128xf32>
    %cst_15 = arith.constant 0.000000e+00 : f32
    %31 = vector.broadcast %cst_15 : f32 to vector<8x128xf32>
    %32 = arith.subf %31, %30 : vector<8x128xf32>
    %33 = math.exp %32 : vector<8x128xf32>
    %34 = math.log1p %33 : vector<8x128xf32>
    %35 = arith.addf %29, %34 : vector<8x128xf32>
    %36 = arith.mulf %24, %35 : vector<8x128xf32>
    %37 = vector.shape_cast %36 : vector<8x128xf32> to vector<1x8x128xf32>
    %cst_16 = arith.constant dense<0.000000e+00> : vector<1xf32>
    %38 = vector.multi_reduction <add>, %37, %cst_16 [1, 2] : vector<1x8x128xf32> to vector<1xf32>
    %39 = vector.shape_cast %38 : vector<1xf32> to vector<1x1x1xf32>
    %40 = vector.extract %39[0, 0, 0] : f32 from vector<1x1x1xf32>
    %41 = vector.broadcast %40 : f32 to vector<1x8x128xf32>
    %c0_17 = arith.constant 0 : index
    %c0_18 = arith.constant 0 : index
    %c0_19 = arith.constant 0 : index
    %42 = vector.load %arg4[%c0_17, %c0_18, %c0_19] : memref<1x8x128xf32, #tpu.memory_space<vmem>>, vector<1x8x128xf32>
    tpu.vector_store %arg4[%c0_17, %c0_18, %c0_19], %41 {strides = array<i32>} : memref<1x8x128xf32, #tpu.memory_space<vmem>>, vector<1x8x128xf32>,
    return
  }
  func.func @transform_0(%arg0: i32) -> (i32, i32) {
    %c0_i32 = arith.constant 0 : i32
    %c0_i32_0 = arith.constant 0 : i32
    return %arg0, %c0_i32 : i32, i32
  }
  func.func @transform_1(%arg0: i32) -> (i32, i32) {
    %c0_i32 = arith.constant 0 : i32
    %c0_i32_0 = arith.constant 0 : i32
    return %arg0, %c0_i32 : i32, i32
  }
  func.func @transform_2(%arg0: i32) -> (i32, i32) {
    %c0_i32 = arith.constant 0 : i32
    %c0_i32_0 = arith.constant 0 : i32
    return %arg0, %c0_i32 : i32, i32
  }
  func.func @transform_3(%arg0: i32) -> (i32, i32, i32) {
    %c0_i32 = arith.constant 0 : i32
    %c0_i32_0 = arith.constant 0 : i32
    %c0_i32_1 = arith.constant 0 : i32
    return %arg0, %c0_i32, %c0_i32_0 : i32, i32, i32
  }
}

</mosaic_0001>

<bundles_post_ra>
// kernel: tpu_custom_call.1
= control target key start
LH: loop header
LB: loop body
LE: loop exit
PB: predicated region body
PF: predicated region fallthrough
CT: control target
= control target key end

     0   :  { %9 = vsyncpa [#allocation3], 0  ;;  %v147_v1 = vmov 0   ;;  %s187_s0 = inlined_call_operand.vmem [shape: s32[8,1], index: 0, kind: input, shape index: {}]   ;;  %s188_s1 = inlined_call_operand.vmem [shape: f32[8,128], index: 1, kind: input, shape index: {}]   ;;  %s189_s2 = inlined_call_operand.hbm [shape: f32[8,128], index: 2, kind: output, shape index: {0}]   ;;  %s190_s3 = inlined_call_operand.hbm [shape: f32[1,8,128], index: 3, kind: output, shape index: {1}]  }
   0x1   :  { %v16_v0 = vld [vmem:[%s187_s0] sm:$0xff]  ;;  %98 = vset.pattern.permute.xlu0 %v147_v1 }
   0x2   :  { %10 = vsyncpa [#allocation5], 0  ;;  %20 = vperm.xlu0 %98, %v16_v0   ;;  %v15_v2 = vld [vmem:[%s188_s1] sm:$0xff]  ;;  %v17_v7 = vlaneseq  ;;  %v148_v12 = vmov 0.4   ;;  %s150_s0 = smov [#allocation2]  }
   0x3   :  { %v23_v3 = vadd.f32 1.0, %v15_v2  ;;  %v149_v31 = vmov 0.3   ;;  %s68_s1 = sshll.u32 %s150_s0, 4  ;;  %s69_s1 = int_to_ptr.vmem [resolvable:$true] %s68_s1 }
   0x4   :  { %v18_v9 = vand.u32 127, %v17_v7  ;;  %s103_s16 = scalar_lea.vmem %s69_s1, 128  ;;  %p108_p1 = scmp.lt.s32.totalorder %s69_s1, %s69_s1 }
   0x5   :  { %v24_v4 = vmul.f32 0.5, %v23_v3  ;;  %p104_p0 = scmp.ne.s32.totalorder %s69_s1, %s103_s16  ;;  %p109_p2 = scmp.lt.s32.totalorder %s103_s16, %s103_s16 }
   0x7   :  { %v25_v5 = vmul.f32 %v24_v4, %v24_v4  ;;  %p110_p3 = por %p109_p2, %p108_p1 }
   0x9   :  { %v26_v6 = vmul.f32 %v25_v5, %v24_v4  ;;  %p111_p4 = pnand %p110_p3, %p104_p0 }
   0xb   :  { %v27_v8 = vmul.f32 2.0, %v26_v6 }
   0xd   :  { %v90_v10 = vadd.f32 -1.0, %v27_v8 }
  0x7d   :  { %v21_v11 = vpop.permute.xlu0 %20 }
  0x7e   :  { %vm22_vm0 = vcmp.eq.s32.totalorder %v18_v9, %v21_v11 }
  0x7f   :  { %v29_v13 = vsel %vm22_vm0, -0.4, %v148_v12  ;;  %v32_v32 = vsel %vm22_vm0, 0.7, %v149_v31 }
  0x80   :  { %v30_v14 = vadd.f32 %v90_v10, %v29_v13 }
  0x82   :  { %v36_v15 = vand.u32 2147483647, %v30_v14  ;;  %31 = vst [vmem:[#allocation2] sm:$0xff] %v30_v14  ;;  %v33_v22 = vmax.f32 %v30_v14, 0.0  ;;  %v34_v24 = vsel %vm22_vm0, %v30_v14, 0.0 }
  0x84   :  { %v37_v16 = vsub.f32 0.0, %v36_v15  ;;  %v35_v28 = vsub.f32 %v33_v22, %v34_v24 }
  0x86   :  { %v38_v17 = vmul.f32 1.442695, %v37_v16 }
  0x88   :  { %99 = vpow2.f32 %v38_v17 }
  0x95   :  { %v100_v18 = vpop.eup %99 }
  0x96   :  { %v40_v19 = vadd.f32 1.0, %v100_v18  ;;  %v43_v20 = vmul.f32 -0.5, %v100_v18  ;;  %v46_v23 = vand.u32 2147483647, %v100_v18 }
  0x98   :  { %101 = vlog2.f32 %v40_v19  ;;  %v44_v21 = vadd.f32 1.0, %v43_v20  ;;  %vm47_vm1 = vcmp.lt.f32.partialorder %v46_v23, 0.0004427343 }
  0x9a   :  { %v45_v27 = vmul.f32 %v100_v18, %v44_v21 }
  0xa5   :  { %v102_v25 = vpop.eup %101 }
  0xa6   :  { %v42_v26 = vmul.f32 0.6931472, %v102_v25 }
  0xa8   :  { %v48_v29 = vsel %vm47_vm1, %v45_v27, %v42_v26 }
  0xa9   :  { %v49_v30 = vadd.f32 %v48_v29, %v35_v28 }
  0xab   :  { %v50_v33 = vmul.f32 %v49_v30, %v32_v32 }
  0xad   :  { %51 = vadd.xlane.f32.xlu0 %v50_v33 }
  0xae   :  { %114 = shalt.err (!%p111_p4)
}
  0xaf   :  { %71 = dma.vmem_to_hbm [thread:$0]  %s69_s1, 128, %s189_s2, [#allocation3]  }
  0xb0   :  { %s151_s19 = smov [#allocation4]  }
  0xb1   :  { %s78_s20 = sshll.u32 %s151_s19, 4  ;;  %s79_s20 = int_to_ptr.vmem [resolvable:$true] %s78_s20 }
  0xb2   :  { %s123_s22 = scalar_lea.vmem %s79_s20, 128  ;;  %p128_p6 = scmp.lt.s32.totalorder %s79_s20, %s79_s20 }
  0xb3   :  { %p124_p5 = scmp.ne.s32.totalorder %s79_s20, %s123_s22  ;;  %p129_p7 = scmp.lt.s32.totalorder %s123_s22, %s123_s22 }
  0xb5   :  { %p130_p8 = por %p129_p7, %p128_p6 }
  0xb7   :  { %p131_p9 = pnand %p130_p8, %p124_p5 }
 0x136   :  { %v52_v34 = vpop.xlane.xlu0 %51 }
 0x137   :  { %v53_v35 = vrot.slane %v52_v34, 4 }
 0x139   :  { %v54_v36 = vadd.f32 %v53_v35, %v52_v34 }
 0x13b   :  { %v55_v37 = vrot.slane %v54_v36, 2 }
 0x13d   :  { %v56_v38 = vadd.f32 %v55_v37, %v54_v36 }
 0x13f   :  { %v57_v39 = vrot.slane %v56_v38, 1 }
 0x141   :  { %v58_v40 = vadd.f32 %v57_v39, %v56_v38 }
 0x143   :  { %91 = vpush %v58_v40 }
 0x174   :  { %s92_s21 = spop %91 }
 0x175   :  { %v60_v41 = vstv %s92_s21 }
 0x176   :  { %61 = vst [vmem:[#allocation4] sm:$0xff] %v60_v41 }
 0x177   :  { %134 = shalt.err (!%p131_p9)
}
 0x178   :  { %81 = dma.vmem_to_hbm [thread:$0]  %s79_s20, 128, %s190_s3, [#allocation5]  }
 0x179   :  { %143 = dma.done.wait [#allocation3], 128  }
 0x17a   :  { %144 = vsyncadd [#allocation3], 4294967168 }
 0x17b   :  { %145 = dma.done.wait [#allocation5], 128  }
 0x17c   :  { %146 = vsyncadd [#allocation5], 4294967168 }
 0x17d   :  { %88 = vsyncpa [#allocation3], 1 }
 0x17e   :  { %89 = vsyncpa [#allocation5], 1 }

</bundles_post_ra>
